<compile_context>
chip_gen: v7x
topology: tpu7x:2x2x1
jax: 0.10.0
libtpu: 0.0.40
codegen_flags: <defaults>
</compile_context>

<pallas_src>
import numpy as np
import jax
import jax.numpy as jnp
from jax.experimental import pallas as pl
from jax.experimental.pallas import tpu as pltpu


# ---------------------------------------------------------------------------
# Pallas kernel: one batch-block per grid step (default: whole batch).
# ---------------------------------------------------------------------------
def gat_kernel(x_ref, adj_ref, w1_ref, bw_ref, b2_ref, out_h_ref, out_att_ref):
    bb, N, F = x_ref.shape
    F2 = 2 * F

    x = x_ref[...]                      # (bb, N, F)
    adj = adj_ref[...]                  # (bb, N, N)
    w1 = w1_ref[...]                    # (F, 4F)  == [W1[:, :F].T | W1[:, F:].T]
    b1 = bw_ref[0:1, :]                 # (1, 2F)
    w2 = bw_ref[1:2, :]                 # (1, 2F)
    b2 = b2_ref[0, 0]                   # scalar (SMEM)

    # First Linear of w_a over both halves of the pair concat as ONE
    # lane-dense MXU matmul:  h[:, :2F] = x @ W1a^T,  h[:, 2F:] = x @ W1b^T.
    h = jnp.dot(x.reshape(bb * N, F), w1,
                preferred_element_type=jnp.float32)              # (bb*N, 4F)
    h1 = (h[:, :F2] + b1).reshape(bb, N, 1, F2)                  # node-i half (+b1 folded)
    h2 = h[:, F2:].reshape(bb, 1, N, F2)                         # node-j half

    # hidden(b,i,j) = relu(W1a x_i + W1b x_j + b1): single broadcast pass.
    hidden = jnp.maximum(h1 + h2, 0.0)                           # (bb, N, N, 2F)

    # Second Linear: A(b,i,j) = w2 . hidden(b,i,j) + b2, one vectorized
    # contraction over the feature axis (einsum 'bijf,f->bij' form).
    A = jnp.sum(hidden * w2.reshape(1, 1, 1, F2), axis=-1) + b2  # (bb, N, N)

    # LeakyReLU(negative_slope=0.04), adjacency mask, softmax over j.
    e = jnp.where(A > 0, A, 0.04 * A)
    logits = jnp.where(adj > 0, e, jnp.float32(-9000000000000000.0))
    m = jnp.max(logits, axis=-1, keepdims=True)
    p = jnp.exp(logits - m)
    att = p * pl.reciprocal(jnp.sum(p, axis=-1, keepdims=True), approx=True)

    out_att_ref[...] = att
    # next_H = attention @ x  (batched over the block's batch entries).
    out_h_ref[...] = jnp.einsum('bij,bjf->bif', att, x,
                                preferred_element_type=jnp.float32)


# ---------------------------------------------------------------------------
# Wrapper: parameter plumbing + pallas_call
# ---------------------------------------------------------------------------
def graph_attention_layer(x, adj, params, *, batch_block=None):
    """batch_block=None -> whole batch in one invocation (best on v5e/v6e).
    On v7x, set batch_block=B//2 so the 2-wide parallel grid uses both TCs."""
    B, N, F = x.shape
    F2 = 2 * F
    W1, b1, W2, b2 = params["W1"], params["b1"], params["W2"], params["b2"]

    if batch_block is None:
        batch_block = B
    assert B % batch_block == 0
    num_blocks = B // batch_block

    # Fuse the first Linear's weight over the two halves of the pair concat:
    # (F, 4F) single lane-dense matmul operand.
    w1_fused = jnp.concatenate(
        [jnp.asarray(W1[:, :F].T, jnp.float32),
         jnp.asarray(W1[:, F:].T, jnp.float32)], axis=1)           # (F, 4F)
    # Pack b1 (row 0) and the second Linear's weight row w2 (row 1) together.
    bw = jnp.stack([jnp.asarray(b1, jnp.float32).reshape(F2),
                    jnp.asarray(W2, jnp.float32).reshape(F2)], axis=0)  # (2, 2F)
    b2_s = jnp.asarray(b2, jnp.float32).reshape(1, 1)              # scalar -> SMEM

    grid_spec = pltpu.PrefetchScalarGridSpec(
        num_scalar_prefetch=0,
        grid=(num_blocks,),
        in_specs=[
            pl.BlockSpec((batch_block, N, F), lambda g: (g, 0, 0)),   # x
            pl.BlockSpec((batch_block, N, N), lambda g: (g, 0, 0)),   # adj
            pl.BlockSpec((F, 4 * F), lambda g: (0, 0)),               # fused W1
            pl.BlockSpec((2, F2), lambda g: (0, 0)),                  # [b1; w2]
            pl.BlockSpec(memory_space=pltpu.MemorySpace.SMEM),        # b2 scalar
        ],
        out_specs=[
            pl.BlockSpec((batch_block, N, F), lambda g: (g, 0, 0)),   # next_H
            pl.BlockSpec((batch_block, N, N), lambda g: (g, 0, 0)),   # attention
        ],
    )

    next_h, att = pl.pallas_call(
        gat_kernel,
        out_shape=(jax.ShapeDtypeStruct((B, N, F), jnp.float32),
                   jax.ShapeDtypeStruct((B, N, N), jnp.float32)),
        grid_spec=grid_spec,
        compiler_params=pltpu.CompilerParams(
            dimension_semantics=("parallel",)),
    )(x, adj, w1_fused, bw, b2_s)

    return next_h, att


# ---------------------------------------------------------------------------
# Pure-JAX reference (mirrors the PyTorch forward exactly) for verification.
# ---------------------------------------------------------------------------
def ref_forward(x, adj, params):
    B, N, F = x.shape
    W1, b1, W2, b2 = params["W1"], params["b1"], params["W2"], params["b2"]
    xi = jnp.repeat(x, N, axis=1)                 # row i*N+j -> x[i]
    xj = jnp.tile(x, (1, N, 1))                   # row i*N+j -> x[j]
    pair = jnp.concatenate([xi, xj], axis=-1)     # (B, N*N, 2F)
    h = jnp.maximum(pair @ W1.T + b1, 0.0)
    A = (h @ W2.T + b2).reshape(B, N, N)
    e = jnp.where(A > 0, A, 0.04 * A)
    logits = jnp.where(adj > 0, e, -9000000000000000.0)
    att = jax.nn.softmax(logits, axis=-1)
    return att @ x, att


# ---------------------------------------------------------------------------
# Deterministic parameter init (xavier-uniform weights, zero biases, as in
# init_weights of the original module).
# ---------------------------------------------------------------------------
def init_params(key, in_features):
    f2 = 2 * in_features
    k1, k2 = jax.random.split(key)
    bound1 = float(np.sqrt(6.0 / (f2 + f2)))
    bound2 = float(np.sqrt(6.0 / (f2 + 1)))
    W1 = jax.random.uniform(k1, (f2, f2), jnp.float32, -bound1, bound1)
    W2 = jax.random.uniform(k2, (1, f2), jnp.float32, -bound2, bound2)
    b1 = jnp.zeros((f2,), jnp.float32)
    b2 = jnp.zeros((1,), jnp.float32)
    return {"W1": W1, "b1": b1, "W2": W2, "b2": b2}


if __name__ == "__main__":
    B, N, F = 2, 8, 32   # batch, nodes (agents), in_features

    key = jax.random.PRNGKey(0)
    kx, ka, kp = jax.random.split(key, 3)

    x = jax.random.normal(kx, (B, N, F), jnp.float32)
    adj = (jax.random.uniform(ka, (B, N, N)) > 0.3).astype(jnp.float32)
    adj = jnp.maximum(adj, jnp.eye(N, dtype=jnp.float32)[None])  # self-loops
    params = init_params(kp, F)

    next_h, att = graph_attention_layer(x, adj, params)
    jax.block_until_ready((next_h, att))

    ref_h, ref_att = ref_forward(x, adj, params)
    # Tolerance slightly loosened vs. 1e-4 because the softmax denominator
    # now uses the EUP approximate reciprocal (pl.reciprocal(approx=True)).
    np.testing.assert_allclose(np.asarray(next_h), np.asarray(ref_h),
                               rtol=2e-3, atol=2e-3)
    np.testing.assert_allclose(np.asarray(att), np.asarray(ref_att),
                               rtol=2e-3, atol=2e-3)

    # Mirrors the PyTorch return tuple (next_H, attention[0, 0, :].numpy());
    # this blocking device->host transfer stays out of any timed path.
    att_row = np.asarray(att[0, 0, :])
    assert att_row.shape == (N,)

    print("KERNEL_OK")
</pallas_src>

<mosaic_0001>
module attributes {stable_mosaic.version = 11 : i64} {
  func.func @gat_kernel(%arg0: i32, %arg1: memref<2x8x32xf32, #tpu.memory_space<vmem>>, %arg2: memref<2x8x8xf32, #tpu.memory_space<vmem>>, %arg3: memref<32x128xf32, #tpu.memory_space<vmem>>, %arg4: memref<2x64xf32, #tpu.memory_space<vmem>>, %arg5: memref<1x1xf32, #tpu.memory_space<smem>>, %arg6: memref<2x8x32xf32, #tpu.memory_space<vmem>>, %arg7: memref<2x8x8xf32, #tpu.memory_space<vmem>>) attributes {dimension_semantics = [#tpu.dimension_semantics<parallel>], iteration_bounds = array<i64: 1>, scalar_prefetch = 0 : i64, scratch_operands = 0 : i64, tpu.core_type = #tpu.core_type<tc>, window_params = [{transform_indices = @transform_0, window_bounds = array<i64: 2, 8, 32>}, {transform_indices = @transform_1, window_bounds = array<i64: 2, 8, 8>}, {pipeline_mode = #tpu.pipeline_mode<synchronous>, transform_indices = @transform_2, window_bounds = array<i64: 32, 128>}, {pipeline_mode = #tpu.pipeline_mode<synchronous>, transform_indices = @transform_3, window_bounds = array<i64: 2, 64>}, {transform_indices = @transform_4, window_bounds = array<i64: 1, 1>}, {transform_indices = @transform_5, window_bounds = array<i64: 2, 8, 32>}, {transform_indices = @transform_6, window_bounds = array<i64: 2, 8, 8>}]} {
    %c0 = arith.constant 0 : index
    %c0_0 = arith.constant 0 : index
    %c0_1 = arith.constant 0 : index
    %0 = vector.load %arg1[%c0, %c0_0, %c0_1] : memref<2x8x32xf32, #tpu.memory_space<vmem>>, vector<2x8x32xf32>
    %c0_2 = arith.constant 0 : index
    %c0_3 = arith.constant 0 : index
    %c0_4 = arith.constant 0 : index
    %1 = vector.load %arg2[%c0_2, %c0_3, %c0_4] : memref<2x8x8xf32, #tpu.memory_space<vmem>>, vector<2x8x8xf32>
    %c0_5 = arith.constant 0 : index
    %c0_6 = arith.constant 0 : index
    %2 = vector.load %arg3[%c0_5, %c0_6] : memref<32x128xf32, #tpu.memory_space<vmem>>, vector<32x128xf32>
    %c0_7 = arith.constant 0 : index
    %c0_8 = arith.constant 0 : index
    %3 = vector.load %arg4[%c0_7, %c0_8] : memref<2x64xf32, #tpu.memory_space<vmem>>, vector<1x64xf32>
    %c1 = arith.constant 1 : index
    %c0_9 = arith.constant 0 : index
    %4 = vector.load %arg4[%c1, %c0_9] : memref<2x64xf32, #tpu.memory_space<vmem>>, vector<1x64xf32>
    %c0_10 = arith.constant 0 : index
    %c0_11 = arith.constant 0 : index
    %5 = memref.load %arg5[%c0_10, %c0_11] : memref<1x1xf32, #tpu.memory_space<smem>>
    %6 = vector.shape_cast %0 : vector<2x8x32xf32> to vector<16x32xf32>
    %cst = arith.constant dense<0.000000e+00> : vector<16x128xf32>
    %7 = tpu.matmul %6, %2, %cst {dimension_numbers = #tpu.dot_dimension_numbers<[1], [0], [0], [1], [0, 0, 1, 1], [], []>} : vector<16x32xf32>, vector<32x128xf32>, vector<16x128xf32> -> vector<16x128xf32>
    %8 = vector.extract_strided_slice %7 {offsets = [0, 0], sizes = [16, 64], strides = [1, 1]} : vector<16x128xf32> to vector<16x64xf32>
    %9 = vector.broadcast %3 : vector<1x64xf32> to vector<16x64xf32>
    %10 = arith.addf %8, %9 : vector<16x64xf32>
    %11 = vector.shape_cast %10 : vector<16x64xf32> to vector<2x8x1x64xf32>
    %12 = vector.extract_strided_slice %7 {offsets = [0, 64], sizes = [16, 64], strides = [1, 1]} : vector<16x128xf32> to vector<16x64xf32>
    %13 = vector.shape_cast %12 : vector<16x64xf32> to vector<2x1x8x64xf32>
    %14 = vector.broadcast %11 : vector<2x8x1x64xf32> to vector<2x8x8x64xf32>
    %15 = vector.broadcast %13 : vector<2x1x8x64xf32> to vector<2x8x8x64xf32>
    %16 = arith.addf %14, %15 : vector<2x8x8x64xf32>
    %cst_12 = arith.constant 0.000000e+00 : f32
    %17 = vector.broadcast %cst_12 : f32 to vector<2x8x8x64xf32>
    %18 = arith.maximumf %16, %17 : vector<2x8x8x64xf32>
    %19 = vector.shape_cast %4 : vector<1x64xf32> to vector<1x1x1x64xf32>
    %20 = vector.broadcast %19 : vector<1x1x1x64xf32> to vector<2x8x8x64xf32>
    %21 = arith.mulf %18, %20 : vector<2x8x8x64xf32>
    %cst_13 = arith.constant dense<0.000000e+00> : vector<2x8x8xf32>
    %22 = vector.multi_reduction <add>, %21, %cst_13 [3] : vector<2x8x8x64xf32> to vector<2x8x8xf32>
    %23 = vector.broadcast %5 : f32 to vector<2x8x8xf32>
    %24 = arith.addf %22, %23 : vector<2x8x8xf32>
    %cst_14 = arith.constant 0.000000e+00 : f32
    %25 = vector.broadcast %cst_14 : f32 to vector<2x8x8xf32>
    %26 = arith.cmpf ogt, %24, %25 : vector<2x8x8xf32>
    %cst_15 = arith.constant 4.000000e-02 : f32
    %27 = vector.broadcast %cst_15 : f32 to vector<2x8x8xf32>
    %28 = arith.mulf %27, %24 : vector<2x8x8xf32>
    %29 = arith.select %26, %24, %28 : vector<2x8x8xi1>, vector<2x8x8xf32>
    %cst_16 = arith.constant 0.000000e+00 : f32
    %30 = vector.broadcast %cst_16 : f32 to vector<2x8x8xf32>
    %31 = arith.cmpf ogt, %1, %30 : vector<2x8x8xf32>
    %cst_17 = arith.constant -9.000000e+15 : f32
    %32 = vector.broadcast %cst_17 : f32 to vector<2x8x8xf32>
    %33 = arith.select %31, %29, %32 : vector<2x8x8xi1>, vector<2x8x8xf32>
    %cst_18 = arith.constant dense<0xFF800000> : vector<2x8xf32>
    %34 = vector.multi_reduction <maximumf>, %33, %cst_18 [2] : vector<2x8x8xf32> to vector<2x8xf32>
    %35 = vector.shape_cast %34 : vector<2x8xf32> to vector<2x8x1xf32>
    %36 = vector.broadcast %35 : vector<2x8x1xf32> to vector<2x8x8xf32>
    %37 = arith.subf %33, %36 : vector<2x8x8xf32>
    %38 = math.exp %37 : vector<2x8x8xf32>
    %cst_19 = arith.constant dense<0.000000e+00> : vector<2x8xf32>
    %39 = vector.multi_reduction <add>, %38, %cst_19 [2] : vector<2x8x8xf32> to vector<2x8xf32>
    %40 = vector.shape_cast %39 : vector<2x8xf32> to vector<2x8x1xf32>
    %41 = tpu.reciprocal %40 {approx = true} : vector<2x8x1xf32> -> vector<2x8x1xf32>
    %42 = vector.broadcast %41 : vector<2x8x1xf32> to vector<2x8x8xf32>
    %43 = arith.mulf %38, %42 : vector<2x8x8xf32>
    %c0_20 = arith.constant 0 : index
    %c0_21 = arith.constant 0 : index
    %c0_22 = arith.constant 0 : index
    %44 = vector.load %arg7[%c0_20, %c0_21, %c0_22] : memref<2x8x8xf32, #tpu.memory_space<vmem>>, vector<2x8x8xf32>
    tpu.vector_store %arg7[%c0_20, %c0_21, %c0_22], %43 {strides = array<i32>} : memref<2x8x8xf32, #tpu.memory_space<vmem>>, vector<2x8x8xf32>,
    "tpu.trace_start"() <{level = 10 : i32, message = "bij,bjf->bif"}> : () -> ()
    %cst_23 = arith.constant dense<0.000000e+00> : vector<2x8x32xf32>
    %45 = tpu.matmul %43, %0, %cst_23 {dimension_numbers = #tpu.dot_dimension_numbers<[2], [1], [1], [2], [0, 0, 0, 1, 1, 2], [0], [0]>} : vector<2x8x8xf32>, vector<2x8x32xf32>, vector<2x8x32xf32> -> vector<2x8x32xf32>
    "tpu.trace_stop"() : () -> ()
    %c0_24 = arith.constant 0 : index
    %c0_25 = arith.constant 0 : index
    %c0_26 = arith.constant 0 : index
    %46 = vector.load %arg6[%c0_24, %c0_25, %c0_26] : memref<2x8x32xf32, #tpu.memory_space<vmem>>, vector<2x8x32xf32>
    tpu.vector_store %arg6[%c0_24, %c0_25, %c0_26], %45 {strides = array<i32>} : memref<2x8x32xf32, #tpu.memory_space<vmem>>, vector<2x8x32xf32>,
    return
  }
  func.func @transform_0(%arg0: i32) -> (i32, i32, i32) {
    %c0_i32 = arith.constant 0 : i32
    %c0_i32_0 = arith.constant 0 : i32
    %c0_i32_1 = arith.constant 0 : i32
    return %arg0, %c0_i32, %c0_i32_0 : i32, i32, i32
  }
  func.func @transform_1(%arg0: i32) -> (i32, i32, i32) {
    %c0_i32 = arith.constant 0 : i32
    %c0_i32_0 = arith.constant 0 : i32
    %c0_i32_1 = arith.constant 0 : i32
    return %arg0, %c0_i32, %c0_i32_0 : i32, i32, i32
  }
  func.func @transform_2(%arg0: i32) -> (i32, i32) {
    %c0_i32 = arith.constant 0 : i32
    %c0_i32_0 = arith.constant 0 : i32
    %c0_i32_1 = arith.constant 0 : i32
    return %c0_i32, %c0_i32_0 : i32, i32
  }
  func.func @transform_3(%arg0: i32) -> (i32, i32) {
    %c0_i32 = arith.constant 0 : i32
    %c0_i32_0 = arith.constant 0 : i32
    %c0_i32_1 = arith.constant 0 : i32
    return %c0_i32, %c0_i32_0 : i32, i32
  }
  func.func @transform_4(%arg0: i32) -> (i32, i32) {
    %c0_i32 = arith.constant 0 : i32
    %c0_i32_0 = arith.constant 0 : i32
    %c0_i32_1 = arith.constant 0 : i32
    return %c0_i32, %c0_i32_0 : i32, i32
  }
  func.func @transform_5(%arg0: i32) -> (i32, i32, i32) {
    %c0_i32 = arith.constant 0 : i32
    %c0_i32_0 = arith.constant 0 : i32
    %c0_i32_1 = arith.constant 0 : i32
    return %arg0, %c0_i32, %c0_i32_0 : i32, i32, i32
  }
  func.func @transform_6(%arg0: i32) -> (i32, i32, i32) {
    %c0_i32 = arith.constant 0 : i32
    %c0_i32_0 = arith.constant 0 : i32
    %c0_i32_1 = arith.constant 0 : i32
    return %arg0, %c0_i32, %c0_i32_0 : i32, i32, i32
  }
}

</mosaic_0001>

<bundles_post_ra>
// kernel: tpu_custom_call.1
= control target key start
LH: loop header
LB: loop body
LE: loop exit
PB: predicated region body
PF: predicated region fallthrough
CT: control target
= control target key end

     0   :  { %13 = vsyncpa [#allocation4], 0  ;;  %s1325_s0 = inlined_call_operand.hbm [shape: f32[2,8,32], index: 0, kind: input, shape index: {}]   ;;  %s1326_s1 = inlined_call_operand.hbm [shape: f32[2,8,8], index: 1, kind: input, shape index: {}]   ;;  %s1327_s2 = inlined_call_operand.hbm [shape: f32[32,128], index: 2, kind: input, shape index: {}]   ;;  %s1328_s3 = inlined_call_operand.vmem [shape: f32[2,64], index: 3, kind: input, shape index: {}]   ;;  %s1329_s4 = inlined_call_operand.<no memory space> [shape: f32[1,1], index: 4, kind: input, shape index: {}]   ;;  %s1330_s5 = inlined_call_operand.hbm [shape: f32[2,8,32], index: 5, kind: output, shape index: {0}]   ;;  %s1331_s6 = inlined_call_operand.hbm [shape: f32[2,8,8], index: 6, kind: output, shape index: {1}]  }
   0x1   :  { %14 = vsyncpa [#allocation7], 0 }
   0x2   :  { %15 = vsyncpa [#allocation5], 0 }
   0x3   :  { %16 = vsyncpa [#allocation11], 0  ;;  %s1017_s21 = smov [#allocation6]   ;;  %s1018_s23 = smov [#allocation3]  }
   0x4   :  { %s34_s22 = sshll.u32 %s1017_s21, 4  ;;  %s22_s24 = sshll.u32 %s1018_s23, 4  ;;  %s35_s22 = int_to_ptr.vmem [resolvable:$true] %s34_s22  ;;  %s1063_s24 = int_to_ptr.vmem [resolvable:$true] %s22_s24 }
   0x5   :  { %s899_s27 = scalar_lea.hbm %s1326_s1, 256 }
   0x6   :  { %p900_p0 = scmp.ne.s32.totalorder %s1326_s1, %s899_s27  ;;  %p903_p1 = scmp.lt.u32.totalorder %s899_s27, %s1326_s1 }
   0x8   :  { %p905_p2 = pnand %p903_p1, %p900_p0 }
   0xa   :  { %908 = shalt.err (!%p905_p2)
}
   0xb   :  { %s909_s8 = scalar_lea.vmem %s35_s22, 256  ;;  %p914_p4 = scmp.lt.s32.totalorder %s35_s22, %s35_s22 }
   0xc   :  { %p910_p3 = scmp.ne.s32.totalorder %s35_s22, %s909_s8  ;;  %p915_p5 = scmp.lt.s32.totalorder %s909_s8, %s909_s8 }
   0xe   :  { %p916_p6 = por %p915_p5, %p914_p4 }
  0x10   :  { %p917_p7 = pnand %p916_p6, %p910_p3 }
  0x12   :  { %920 = shalt.err (!%p917_p7)
}
  0x13   :  { %s1019_s9 = smov 128   ;;  %s1020_s10 = smov 8  }
  0x14   :  { %40 = dma.hbm_to_vmem [thread:$0]  %s1326_s1, 256, %s35_s22, [#allocation7], %s1019_s9, %s1019_s9, %s1020_s10  }
  0x15   :  { %s921_s15 = scalar_lea.hbm %s1325_s0, 256 }
  0x16   :  { %p922_p8 = scmp.ne.s32.totalorder %s1325_s0, %s921_s15  ;;  %p925_p9 = scmp.lt.u32.totalorder %s921_s15, %s1325_s0 }
  0x18   :  { %p927_p10 = pnand %p925_p9, %p922_p8 }
  0x1a   :  { %930 = shalt.err (!%p927_p10)
}
  0x1b   :  { %s931_s20 = scalar_lea.vmem %s1063_s24, 256  ;;  %p936_p12 = scmp.lt.s32.totalorder %s1063_s24, %s1063_s24 }
  0x1c   :  { %p932_p11 = scmp.ne.s32.totalorder %s1063_s24, %s931_s20  ;;  %p937_p13 = scmp.lt.s32.totalorder %s931_s20, %s931_s20 }
  0x1e   :  { %p938_p0 = por %p937_p13, %p936_p12 }
  0x20   :  { %p939_p1 = pnand %p938_p0, %p932_p11 }
  0x22   :  { %942 = shalt.err (!%p939_p1)
}
  0x23   :  { %28 = dma.hbm_to_vmem [thread:$0]  %s1325_s0, 256, %s1063_s24, [#allocation4], %s1019_s9, %s1019_s9, %s1020_s10  }
  0x24   :  { %s1021_s22 = smov [#allocation8]   ;;  %s943_s27 = scalar_lea.hbm %s1327_s2, 512 }
  0x25   :  { %s46_s23 = sshll.u32 %s1021_s22, 4  ;;  %p944_p2 = scmp.ne.s32.totalorder %s1327_s2, %s943_s27  ;;  %s47_s23 = int_to_ptr.vmem [resolvable:$true] %s46_s23 }
  0x26   :  { %p947_p3 = scmp.lt.u32.totalorder %s943_s27, %s1327_s2 }
  0x28   :  { %p949_p4 = pnand %p947_p3, %p944_p2 }
  0x2a   :  { %952 = shalt.err (!%p949_p4)
}
  0x2b   :  { %s953_s8 = scalar_lea.vmem %s47_s23, 512  ;;  %p958_p6 = scmp.lt.s32.totalorder %s47_s23, %s47_s23 }
  0x2c   :  { %p954_p5 = scmp.ne.s32.totalorder %s47_s23, %s953_s8  ;;  %p959_p7 = scmp.lt.s32.totalorder %s953_s8, %s953_s8 }
  0x2e   :  { %p960_p8 = por %p959_p7, %p958_p6 }
  0x30   :  { %p961_p9 = pnand %p960_p8, %p954_p5 }
  0x32   :  { %964 = shalt.err (!%p961_p9)
}
  0x33   :  { %52 = dma.hbm_to_vmem [thread:$0]  %s1327_s2, 512, %s47_s23, [#allocation7], %s1019_s9, %s1019_s9, %s1020_s10  }
  0x34   :  { %1009 = dma.done.wait [#allocation4], 256  }
  0x35   :  { %1010 = vsyncadd [#allocation4], 4294967040 }
  0x36   :  { %1011 = dma.done.wait [#allocation7], 768  }
  0x37   :  { %1012 = vsyncadd [#allocation7], 4294966528  ;;  %vm77_vm0 = vcmask 261120   ;;  %v70_v0 = vld [vmem:[#allocation8] sm:$0xff]  ;;  %v71_v1 = vld [vmem:[#allocation8 + $0x8] sm:$0xff]  ;;  %v171_v8 = vlaneseq  ;;  %s1022_s2 = smov 64  }
  0x38   :  { %v72_v2 = vld [vmem:[#allocation8 + $0x10] sm:$0xff]  ;;  %v872_v3 = vpack.c.bf16 %v71_v1, %v70_v0  ;;  %v73_v4 = vld [vmem:[#allocation8 + $0x18] sm:$0xff]  ;;  %v1115_v5 = vld [vmem:[#allocation3] sm:$0xff]  ;;  %v1023_v14 = vmov 1966171168   ;;  %vm405_vm1 = vcmask 523264  }
  0x39   :  { %v876_v6 = vpack.c.bf16 %v73_v4, %v72_v2  ;;  %859 = vmatprep.mubr.msk.f32.mxu0 %vm77_vm0, %v1115_v5  ;;  %v1119_v7 = vld [vmem:[#allocation3 + $0x8] sm:$0xff]  ;;  %v172_v9 = vshrl.u32 %v171_v8, 7  ;;  %v538_v10 = vand.u32 127, %v171_v8  ;;  %v169_v15 = vunpack.c.l.s4 %v1023_v14  ;;  %v837_v16 = vld [vmem:[%s1328_s3] ss:$0 sm:$0xff] }
  0x3a   :  { %873 = vmatprep.subr.bf16.mxu0 %v872_v3  ;;  %v1149_v39 = vld [vmem:[%s1328_s3 + $0x1] ss:$0 sm:$0xff]  ;;  %vm603_vm6 = vcmask 1041409   ;;  %vm605_vm9 = vcmask 1042434   ;;  %vm607_vm12 = vcmask 1043459   ;;  %vm609_vm15 = vcmask 1044484  }
  0x3b   :  { %875 = vmatpush3.bf16.msra.mxu0 %v872_v3  ;;  %v1123_v11 = vsub.s32 %v538_v10, %v172_v9  ;;  %v170_v17 = vunpack.c.0.s8 %v169_v15  ;;  %v1140_v32 = vsub.s32 0, %v172_v9 }
  0x3c   :  { %877 = vmatprep.subr.bf16.mxu0 %v876_v6 }
  0x3d   :  { %v1130_v20 = vsub.s32 %v170_v17, %v172_v9 }
  0x3f   :  { %879 = vmatpush3.bf16.msra.mxu0 %v876_v6 }
  0x42   :  { %860 = vmatmul.mubr.msk.f32.vlgmr.msra.gmra.mrb[0].mxu0 %vm77_vm0, %v1119_v7 }
 0x115   :  { %v861_v12 = vpop.f32.mrb[0].mxu0 }
 0x116   :  { %v150_v13 = vpop.f32.mrb[1].mxu0  ;;  %v164_v18 = vadd.f32 %v861_v12, %v837_v16 }
 0x117   :  { %347 = vrot.lane.b32.xlu0 %v150_v13, %s1022_s2  ;;  %v1128_v19 = vadd.f32 %v837_v16, %v150_v13 }
 0x118   :  { %v216_v21 = vcombine.high %v164_v18, %v164_v18  ;;  %v223_v23 = vrot.slane %v164_v18, %v1130_v20 }
 0x119   :  { %v174_v22 = vrot.slane %v1128_v19, %v1130_v20 }
 0x11a   :  { %v230_v24 = vrot.slane %v216_v21, %v1130_v20  ;;  %v231_v26 = vcombine.high %v223_v23, %v223_v23  ;;  %v239_v30 = vrot.slane %v223_v23, %v1130_v20 }
 0x11b   :  { %349 = vrot.lane.b32.xlu0 %v861_v12, %s1022_s2  ;;  %v190_v25 = vrot.slane %v174_v22, %v1130_v20  ;;  %v182_v44 = vcombine.high %v174_v22, %v174_v22  ;;  %v167_v12 = vcombine.high %v1128_v19, %v1128_v19 }
 0x11c   :  { %v232_v27 = vcombine.high %v230_v24, %v230_v24  ;;  %v253_v29 = vrot.slane %v231_v26, %v1130_v20  ;;  %v261_v35 = vcombine.high %v239_v30, %v239_v30  ;;  %v300_v41 = vrot.slane %v239_v30, %v1140_v32 }
 0x11d   :  { %v212_v28 = vcombine.high %v190_v25, %v190_v25  ;;  %v204_v60 = vrot.slane %v182_v44, %v1130_v20  ;;  %v268_v61 = vrot.slane %v190_v25, %v1140_v32  ;;  %v246_v13 = vrot.slane %v230_v24, %v1130_v20 }
 0x11e   :  { %v260_v31 = vrot.slane %v232_v27, %v1130_v20  ;;  %v263_v34 = vcombine.high %v253_v29, %v253_v29  ;;  %v304_v43 = vrot.slane %v253_v29, %v1140_v32  ;;  %v308_v47 = vrot.slane %v261_v35, %v1140_v32 }
 0x11f   :  { %v276_v33 = vrot.slane %v212_v28, %v1140_v32  ;;  %v272_v10 = vrot.slane %v204_v60, %v1140_v32  ;;  %v181_v22 = vrot.slane %v167_v12, %v1130_v20  ;;  %v214_v23 = vcombine.high %v204_v60, %v204_v60 }
 0x120   :  { %v264_v37 = vcombine.high %v260_v31, %v260_v31  ;;  %v312_v42 = vrot.slane %v263_v34, %v1140_v32  ;;  %v320_v46 = vrot.slane %v260_v31, %v1140_v32  ;;  %v316_v19 = vrot.slane %v246_v13, %v1140_v32 }
 0x121   :  { %v183_v29 = vcombine.high %v181_v22, %v181_v22  ;;  %v197_v30 = vrot.slane %v181_v22, %v1130_v20  ;;  %v280_v31 = vrot.slane %v214_v23, %v1140_v32 }
 0x122   :  { %v328_v48 = vrot.slane %v264_v37, %v1140_v32 }
 0x189   :  { %v1143_v36 = vpop.permute.xlu0 %347 }
 0x18a   :  { %v355_v38 = vadd.f32 %v1143_v36, %v276_v33  ;;  %v353_v3 = vadd.f32 %v1143_v36, %v268_v61  ;;  %v354_v15 = vadd.f32 %v1143_v36, %v272_v10  ;;  %v356_v37 = vadd.f32 %v1143_v36, %v280_v31 }
 0x18c   :  { %v371_v40 = vmax.f32 %v355_v38, 0.0  ;;  %v369_v14 = vmax.f32 %v353_v3, 0.0  ;;  %v370_v25 = vmax.f32 %v354_v15, 0.0  ;;  %v211_v38 = vrot.slane %v183_v29, %v1130_v20 }
 0x18d   :  { %v1154_v45 = vpop.permute.xlu0 %349  ;;  %v1225_v15 = vstv %s1329_s4  ;;  %s1026_s4 = smov [#allocation10]  }
 0x18e   :  { %v391_v49 = vmul.f32 %v1149_v39, %v371_v40  ;;  %v361_v50 = vadd.f32 %v1154_v45, %v300_v41  ;;  %v364_v51 = vadd.f32 %v1154_v45, %v312_v42  ;;  %v362_v52 = vadd.f32 %v1154_v45, %v304_v43  ;;  %s818_s16 = sshll.u32 %s1026_s4, 4  ;;  %s819_s16 = int_to_ptr.vmem [resolvable:$true] %s818_s16 }
 0x18f   :  { %v366_v53 = vadd.f32 %v1154_v45, %v320_v46  ;;  %v363_v54 = vadd.f32 %v1154_v45, %v308_v47  ;;  %v368_v55 = vadd.f32 %v1154_v45, %v328_v48  ;;  %v389_v27 = vmul.f32 %v1149_v39, %v369_v14  ;;  %s965_s17 = scalar_lea.vmem %s819_s16, 256  ;;  %p970_p11 = scmp.lt.s32.totalorder %s819_s16, %s819_s16 }
 0x190   :  { %v412_v56 = vsel %vm405_vm1, %v391_v49, 0.0  ;;  %v377_v57 = vmax.f32 %v361_v50, 0.0  ;;  %v380_v58 = vmax.f32 %v364_v51, 0.0  ;;  %v378_v59 = vmax.f32 %v362_v52, 0.0  ;;  %p966_p10 = scmp.ne.s32.totalorder %s819_s16, %s965_s17  ;;  %p971_p12 = scmp.lt.s32.totalorder %s965_s17, %s965_s17 }
 0x191   :  { %413 = vadd.xlane.f32.xlu0 %v412_v56  ;;  %v382_v62 = vmax.f32 %v366_v53, 0.0  ;;  %v379_v1 = vmax.f32 %v363_v54, 0.0  ;;  %v384_v2 = vmax.f32 %v368_v55, 0.0  ;;  %v365_v28 = vadd.f32 %v1154_v45, %v316_v19 }
 0x192   :  { %v397_v63 = vmul.f32 %v1149_v39, %v377_v57  ;;  %v400_v0 = vmul.f32 %v1149_v39, %v380_v58  ;;  %v398_v8 = vmul.f32 %v1149_v39, %v378_v59  ;;  %v406_v33 = vsel %vm405_vm1, %v389_v27, 0.0  ;;  %p972_p13 = por %p971_p12, %p970_p11 }
 0x193   :  { %v402_v9 = vmul.f32 %v1149_v39, %v382_v62  ;;  %v399_v18 = vmul.f32 %v1149_v39, %v379_v1  ;;  %v404_v21 = vmul.f32 %v1149_v39, %v384_v2  ;;  %v390_v34 = vmul.f32 %v1149_v39, %v370_v25 }
 0x194   :  { %v430_v4 = vsel %vm405_vm1, %v397_v63, 0.0  ;;  %v439_v6 = vsel %vm405_vm1, %v400_v0, 0.0  ;;  %v433_v16 = vsel %vm405_vm1, %v398_v8, 0.0  ;;  %v381_v35 = vmax.f32 %v365_v28, 0.0  ;;  %p973_p0 = pnand %p972_p13, %p966_p10 }
 0x195   :  { %431 = vadd.xlane.f32.xlu1 %v430_v4  ;;  %440 = vadd.xlane.f32.xlu0 %v439_v6  ;;  %v445_v17 = vsel %vm405_vm1, %v402_v9, 0.0  ;;  %v436_v24 = vsel %vm405_vm1, %v399_v18, 0.0  ;;  %v451_v26 = vsel %vm405_vm1, %v404_v21, 0.0  ;;  %v284_v40 = vrot.slane %v197_v30, %v1140_v32 }
 0x196   :  { %v409_v41 = vsel %vm405_vm1, %v390_v34, 0.0  ;;  %v401_v42 = vmul.f32 %v1149_v39, %v381_v35  ;;  %v372_v43 = vmax.f32 %v356_v37, 0.0  ;;  %v213_v46 = vcombine.high %v197_v30, %v197_v30 }
 0x197   :  { %v357_v44 = vadd.f32 %v1143_v36, %v284_v40  ;;  %v288_v47 = vrot.slane %v211_v38, %v1140_v32  ;;  %v215_v52 = vcombine.high %v211_v38, %v211_v38  ;;  %v262_v58 = vcombine.high %v246_v13, %v246_v13 }
 0x198   :  { %v442_v48 = vsel %vm405_vm1, %v401_v42, 0.0  ;;  %v392_v49 = vmul.f32 %v1149_v39, %v372_v43  ;;  %v292_v51 = vrot.slane %v213_v46, %v1140_v32 }
 0x199   :  { %434 = vadd.xlane.f32.xlu1 %v433_v16  ;;  %446 = vadd.xlane.f32.xlu0 %v445_v17  ;;  %v373_v50 = vmax.f32 %v357_v44, 0.0  ;;  %v358_v20 = vadd.f32 %v1143_v36, %v288_v47  ;;  %v296_v57 = vrot.slane %v215_v52, %v1140_v32  ;;  %v324_v63 = vrot.slane %v262_v58, %v1140_v32 }
 0x19a   :  { %v415_v53 = vsel %vm405_vm1, %v392_v49, 0.0  ;;  %v359_v56 = vadd.f32 %v1143_v36, %v292_v51 }
 0x19b   :  { %v393_v54 = vmul.f32 %v1149_v39, %v373_v50  ;;  %v374_v55 = vmax.f32 %v358_v20, 0.0  ;;  %v360_v62 = vadd.f32 %v1143_v36, %v296_v57  ;;  %v367_v3 = vadd.f32 %v1154_v45, %v324_v63 }
 0x19c   :  { %v375_v61 = vmax.f32 %v359_v56, 0.0 }
 0x19d   :  { %437 = vadd.xlane.f32.xlu1 %v436_v24  ;;  %452 = vadd.xlane.f32.xlu0 %v451_v26  ;;  %v418_v59 = vsel %vm405_vm1, %v393_v54, 0.0  ;;  %v394_v60 = vmul.f32 %v1149_v39, %v374_v55  ;;  %v376_v2 = vmax.f32 %v360_v62, 0.0  ;;  %v383_v8 = vmax.f32 %v367_v3, 0.0 }
 0x19e   :  { %v395_v1 = vmul.f32 %v1149_v39, %v375_v61 }
 0x19f   :  { %v421_v0 = vsel %vm405_vm1, %v394_v60, 0.0  ;;  %v396_v6 = vmul.f32 %v1149_v39, %v376_v2  ;;  %v403_v36 = vmul.f32 %v1149_v39, %v383_v8 }
 0x1a0   :  { %v424_v4 = vsel %vm405_vm1, %v395_v1, 0.0 }
 0x1a1   :  { %407 = vadd.xlane.f32.xlu1 %v406_v33  ;;  %v427_v9 = vsel %vm405_vm1, %v396_v6, 0.0  ;;  %v448_v32 = vsel %vm405_vm1, %v403_v36, 0.0  ;;  %vm613_vm1 = vcmask 1046534  }
 0x1a5   :  { %410 = vadd.xlane.f32.xlu1 %v409_v41 }
 0x1a9   :  { %443 = vadd.xlane.f32.xlu1 %v442_v48 }
 0x1ad   :  { %416 = vadd.xlane.f32.xlu1 %v415_v53 }
 0x1b1   :  { %419 = vadd.xlane.f32.xlu1 %v418_v59 }
 0x1b5   :  { %422 = vadd.xlane.f32.xlu1 %v421_v0 }
 0x1b9   :  { %425 = vadd.xlane.f32.xlu1 %v424_v4 }
 0x1bd   :  { %428 = vadd.xlane.f32.xlu1 %v427_v9 }
 0x1c1   :  { %449 = vadd.xlane.f32.xlu1 %v448_v32 }
 0x21e   :  { %v414_v16 = vpop.xlane.xlu0 %413 }
 0x21f   :  { %v457_v17 = vadd.f32 %v1225_v15, %v414_v16 }
 0x221   :  { %v489_v39 = vmul.f32 0.04, %v457_v17  ;;  %vm473_vm2 = vcmp.gt.f32.partialorder %v457_v17, 0.0 }
 0x222   :  { %v432_v10 = vpop.xlane.xlu1 %431  ;;  %v441_v21 = vpop.xlane.xlu0 %440 }
 0x223   :  { %v463_v22 = vadd.f32 %v1225_v15, %v432_v10  ;;  %v466_v25 = vadd.f32 %v1225_v15, %v441_v21  ;;  %v1233_v27 = vsel %vm473_vm2, %v457_v17, %v489_v39  ;;  %vm611_vm2 = vcmask 1045509  }
 0x224   :  { %v550_v37 = vrot.slane %v1233_v27, %v1123_v11 }
 0x225   :  { %v495_v28 = vmul.f32 0.04, %v463_v22  ;;  %vm479_vm3 = vcmp.gt.f32.partialorder %v463_v22, 0.0  ;;  %v498_v34 = vmul.f32 0.04, %v466_v25  ;;  %vm482_vm5 = vcmp.gt.f32.partialorder %v466_v25, 0.0 }
 0x226   :  { %v435_v12 = vpop.xlane.xlu1 %434  ;;  %v447_v40 = vpop.xlane.xlu0 %446 }
 0x227   :  { %v464_v24 = vadd.f32 %v1225_v15, %v435_v12  ;;  %v511_v42 = vsel %vm479_vm3, %v463_v22, %v495_v28  ;;  %v1242_v50 = vsel %vm482_vm5, %v466_v25, %v498_v34  ;;  %v468_v55 = vadd.f32 %v1225_v15, %v447_v40  ;;  %v68_v22 = vld [vmem:[#allocation6] sm:$0xff] }
 0x228   :  { %v574_v54 = vrot.slane %v511_v42, %v1123_v11  ;;  %vm615_vm3 = vcmask 1047559   ;;  %v586_v2 = vrot.slane %v1242_v50, %v1123_v11 }
 0x229   :  { %v496_v38 = vmul.f32 0.04, %v464_v24  ;;  %vm480_vm7 = vcmp.gt.f32.partialorder %v464_v24, 0.0  ;;  %v500_v16 = vmul.f32 0.04, %v468_v55 }
 0x22a   :  { %v438_v13 = vpop.xlane.xlu1 %437  ;;  %v453_v59 = vpop.xlane.xlu0 %452 }
 0x22b   :  { %v465_v29 = vadd.f32 %v1225_v15, %v438_v13  ;;  %v512_v51 = vsel %vm480_vm7, %v464_v24, %v496_v38  ;;  %vm628_vm7 = vcmask 64512   ;;  %v470_v8 = vadd.f32 %v1225_v15, %v453_v59 }
 0x22c   :  { %v578_v63 = vrot.slane %v512_v51, %v1123_v11 }
 0x22d   :  { %v497_v43 = vmul.f32 0.04, %v465_v29  ;;  %vm481_vm10 = vcmp.gt.f32.partialorder %v465_v29, 0.0 }
 0x22e   :  { %v408_v14 = vpop.xlane.xlu1 %407 }
 0x22f   :  { %v455_v26 = vadd.f32 %v1225_v15, %v408_v14  ;;  %v513_v58 = vsel %vm481_vm10, %v465_v29, %v497_v43 }
 0x230   :  { %v582_v6 = vrot.slane %v513_v58, %v1123_v11 }
 0x231   :  { %v487_v41 = vmul.f32 0.04, %v455_v26  ;;  %vm471_vm8 = vcmp.gt.f32.partialorder %v455_v26, 0.0 }
 0x232   :  { %v411_v45 = vpop.xlane.xlu1 %410 }
 0x233   :  { %v456_v19 = vadd.f32 %v1225_v15, %v411_v45  ;;  %v503_v52 = vsel %vm471_vm8, %v455_v26, %v487_v41  ;;  %v617_v45 = vsel %vm603_vm6, %v578_v63, %v574_v54  ;;  %vm484_vm8 = vcmp.gt.f32.partialorder %v468_v55, 0.0  ;;  %v69_v41 = vld [vmem:[#allocation6 + $0x8] sm:$0xff] }
 0x234   :  { %v542_v0 = vrot.slane %v503_v52, %v1123_v11 }
 0x235   :  { %v488_v31 = vmul.f32 0.04, %v456_v19  ;;  %vm472_vm4 = vcmp.gt.f32.partialorder %v456_v19, 0.0 }
 0x236   :  { %v444_v18 = vpop.xlane.xlu1 %443 }
 0x237   :  { %v504_v46 = vsel %vm472_vm4, %v456_v19, %v488_v31  ;;  %v467_v47 = vadd.f32 %v1225_v15, %v444_v18  ;;  %v502_v19 = vmul.f32 0.04, %v470_v8 }
 0x238   :  { %v546_v56 = vrot.slane %v504_v46, %v1123_v11 }
 0x239   :  { %v499_v60 = vmul.f32 0.04, %v467_v47  ;;  %vm483_vm4 = vcmp.gt.f32.partialorder %v467_v47, 0.0 }
 0x23a   :  { %v417_v23 = vpop.xlane.xlu1 %416  ;;  %v604_v9 = vsel %vm603_vm6, %v546_v56, %v542_v0  ;;  %vm486_vm6 = vcmp.gt.f32.partialorder %v470_v8, 0.0 }
 0x23b   :  { %v458_v33 = vadd.f32 %v1225_v15, %v417_v23  ;;  %v515_v10 = vsel %vm483_vm4, %v467_v47, %v499_v60  ;;  %v606_v18 = vsel %vm605_vm9, %v550_v37, %v604_v9  ;;  %v618_v23 = vsel %vm605_vm9, %v582_v6, %v617_v45 }
 0x23c   :  { %v590_v25 = vrot.slane %v515_v10, %v1123_v11  ;;  %v619_v37 = vsel %vm607_vm12, %v586_v2, %v618_v23  ;;  %v518_v38 = vsel %vm486_vm6, %v470_v8, %v502_v19 }
 0x23d   :  { %v490_v48 = vmul.f32 0.04, %v458_v33  ;;  %vm474_vm11 = vcmp.gt.f32.partialorder %v458_v33, 0.0 }
 0x23e   :  { %v420_v30 = vpop.xlane.xlu1 %419 }
 0x23f   :  { %v459_v35 = vadd.f32 %v1225_v15, %v420_v30  ;;  %v506_v61 = vsel %vm474_vm11, %v458_v33, %v490_v48  ;;  %v516_v30 = vsel %vm484_vm8, %v468_v55, %v500_v16  ;;  %vm519_vm11 = vcmp.gt.f32.partialorder %v68_v22, 0.0 }
 0x240   :  { %v554_v36 = vrot.slane %v506_v61, %v1123_v11  ;;  %v594_v42 = vrot.slane %v516_v30, %v1123_v11  ;;  %v602_v48 = vrot.slane %v518_v38, %v1123_v11 }
 0x241   :  { %v491_v20 = vmul.f32 0.04, %v459_v35  ;;  %vm475_vm13 = vcmp.gt.f32.partialorder %v459_v35, 0.0 }
 0x242   :  { %v423_v44 = vpop.xlane.xlu1 %422  ;;  %v608_v24 = vsel %vm607_vm12, %v554_v36, %v606_v18  ;;  %vm1025_vm12 = vmmov 0  }
 0x243   :  { %v460_v49 = vadd.f32 %v1225_v15, %v423_v44  ;;  %v507_v1 = vsel %vm475_vm13, %v459_v35, %v491_v20  ;;  %vm520_vm13 = vcmp.gt.f32.partialorder %v69_v41, 0.0 }
 0x244   :  { %v558_v12 = vrot.slane %v507_v1, %v1123_v11 }
 0x245   :  { %v492_v53 = vmul.f32 0.04, %v460_v49  ;;  %vm476_vm14 = vcmp.gt.f32.partialorder %v460_v49, 0.0 }
 0x246   :  { %v426_v57 = vpop.xlane.xlu1 %425  ;;  %v610_v29 = vsel %vm609_vm15, %v558_v12, %v608_v24 }
 0x247   :  { %v461_v62 = vadd.f32 %v1225_v15, %v426_v57  ;;  %v508_v3 = vsel %vm476_vm14, %v460_v49, %v492_v53 }
 0x248   :  { %v562_v17 = vrot.slane %v508_v3, %v1123_v11 }
 0x249   :  { %vm477_vm5 = vcmp.gt.f32.partialorder %v461_v62, 0.0  ;;  %v493_v4 = vmul.f32 0.04, %v461_v62 }
 0x24a   :  { %v429_v32 = vpop.xlane.xlu1 %428  ;;  %v612_v33 = vsel %vm611_vm2, %v562_v17, %v610_v29 }
 0x24b   :  { %v509_v13 = vsel %vm477_vm5, %v461_v62, %v493_v4  ;;  %v462_v14 = vadd.f32 %v1225_v15, %v429_v32  ;;  %v1024_v62 = vmov 0.0  }
 0x24c   :  { %v566_v21 = vrot.slane %v509_v13, %v1123_v11  ;;  %862 = vmatprep.subr.mxu1 %v1024_v62  ;;  %864 = vmatprep.mubr.msk.f32.mxu1 %vm1025_vm12, %v1024_v62 }
 0x24d   :  { %vm478_vm10 = vcmp.gt.f32.partialorder %v462_v14, 0.0  ;;  %v494_v39 = vmul.f32 0.04, %v462_v14  ;;  %863 = vmatpush3.msra.mxu1 %v1115_v5 }
 0x24e   :  { %v450_v26 = vpop.xlane.xlu1 %449  ;;  %v614_v35 = vsel %vm613_vm1, %v566_v21, %v612_v33  ;;  %867 = vmatprep.subr.mxu1 %v1024_v62 }
 0x24f   :  { %v510_v27 = vsel %vm478_vm10, %v462_v14, %v494_v39  ;;  %v469_v28 = vadd.f32 %v1225_v15, %v450_v26  ;;  %v620_v15 = vsel %vm609_vm15, %v590_v25, %v619_v37 }
 0x250   :  { %v570_v31 = vrot.slane %v510_v27, %v1123_v11  ;;  %v621_v49 = vsel %vm611_vm2, %v594_v42, %v620_v15 }
 0x251   :  { %vm485_vm9 = vcmp.gt.f32.partialorder %v469_v28, 0.0  ;;  %v501_v34 = vmul.f32 0.04, %v469_v28 }
 0x252   :  { %v616_v40 = vsel %vm615_vm3, %v570_v31, %v614_v35 }
 0x253   :  { %v517_v43 = vsel %vm485_vm9, %v469_v28, %v501_v34  ;;  %v626_v44 = vsel %vm519_vm11, %v616_v40, -9e+15 }
 0x254   :  { %v598_v46 = vrot.slane %v517_v43, %v1123_v11  ;;  %v629_v47 = vsel %vm628_vm7, %v626_v44, -inf }
 0x255   :  { %630 = vmax.xlane.f32.xlu1 %v629_v47 }
 0x256   :  { %v622_v50 = vsel %vm613_vm1, %v598_v46, %v621_v49 }
 0x257   :  { %v623_v20 = vsel %vm615_vm3, %v602_v48, %v622_v50 }
 0x258   :  { %v627_v51 = vsel %vm520_vm13, %v623_v20, -9e+15 }
 0x259   :  { %v632_v52 = vsel %vm628_vm7, %v627_v51, -inf }
 0x25a   :  { %633 = vmax.xlane.f32.xlu0 %v632_v52 }
 0x2e2   :  { %v631_v53 = vpop.xlane.xlu1 %630 }
 0x2e3   :  { %v635_v54 = vsub.f32 %v626_v44, %v631_v53 }
 0x2e5   :  { %v637_v55 = vmul.f32 1.442695, %v635_v54 }
 0x2e7   :  { %891 = vpow2.f32 %v637_v55  ;;  %v634_v56 = vpop.xlane.xlu0 %633 }
 0x2e8   :  { %v636_v57 = vsub.f32 %v627_v51, %v634_v56 }
 0x2ea   :  { %v639_v58 = vmul.f32 1.442695, %v636_v57 }
 0x2ec   :  { %893 = vpow2.f32 %v639_v58 }
 0x2f1   :  { %v892_v11 = vpop.eup %891 }
 0x2f2   :  { %v641_v59 = vsel %vm628_vm7, %v892_v11, 0.0 }
 0x2f3   :  { %642 = vadd.xlane.f32.xlu1 %v641_v59 }
 0x2f6   :  { %v894_v60 = vpop.eup %893 }
 0x2f7   :  { %v644_v61 = vsel %vm628_vm7, %v894_v60, 0.0 }
 0x2f8   :  { %645 = vadd.xlane.f32.xlu0 %v644_v61 }
 0x380   :  { %v643_v63 = vpop.xlane.xlu1 %642 }
 0x381   :  { %895 = vrcp.f32 %v643_v63 }
 0x385   :  { %v646_v0 = vpop.xlane.xlu0 %645 }
 0x386   :  { %897 = vrcp.f32 %v646_v0 }
 0x38b   :  { %v896_v1 = vpop.eup %895 }
 0x38c   :  { %v649_v2 = vmul.f32 %v896_v1, %v892_v11 }
 0x38e   :  { %865 = vmatmul.mubr.msk.f32.vlgmr.msra.gmra.mrb[0].mxu1 %vm628_vm7, %v649_v2  ;;  %651 = vst.msk [vmem:[#allocation10] sm:$0xff] %vm628_vm7, %v649_v2 }
 0x38f   :  { %868 = vmatpush3.msra.mxu1 %v1119_v7  ;;  %869 = vmatprep.mubr.msk.f32.mxu1 %vm1025_vm12, %v1024_v62 }
 0x390   :  { %v898_v3 = vpop.eup %897 }
 0x391   :  { %v650_v4 = vmul.f32 %v898_v3, %v894_v60 }
 0x393   :  { %652 = vst.msk [vmem:[#allocation10 + $0x8] sm:$0xff] %vm628_vm7, %v650_v4  ;;  %870 = vmatmul.mubr.msk.f32.vlgmr.msra.gmra.mrb[2].mxu1 %vm628_vm7, %v650_v4 }
 0x394   :  { %976 = shalt.err (!%p973_p0)
}
 0x395   :  { %s977_s20 = scalar_lea.hbm %s1331_s6, 256 }
 0x396   :  { %p978_p1 = scmp.ne.s32.totalorder %s1331_s6, %s977_s20  ;;  %p981_p2 = scmp.lt.u32.totalorder %s977_s20, %s1331_s6 }
 0x398   :  { %p983_p3 = pnand %p981_p2, %p978_p1 }
 0x39a   :  { %986 = shalt.err (!%p983_p3)
}
 0x39b   :  { %824 = dma.vmem_to_hbm [thread:$0]  %s819_s16, 256, %s1331_s6, [#allocation11], %s1019_s9, %s1019_s9, %s1020_s10  }
 0x39c   :  { %s1027_s27 = smov [#allocation9]  }
 0x39d   :  { %s806_s28 = sshll.u32 %s1027_s27, 4  ;;  %s807_s28 = int_to_ptr.vmem [resolvable:$true] %s806_s28 }
 0x39e   :  { %s987_s29 = scalar_lea.vmem %s807_s28, 256  ;;  %p992_p5 = scmp.lt.s32.totalorder %s807_s28, %s807_s28 }
 0x39f   :  { %p988_p4 = scmp.ne.s32.totalorder %s807_s28, %s987_s29  ;;  %p993_p6 = scmp.lt.s32.totalorder %s987_s29, %s987_s29 }
 0x3a1   :  { %p994_p7 = por %p993_p6, %p992_p5 }
 0x3a3   :  { %p995_p8 = pnand %p994_p7, %p988_p4 }
 0x461   :  { %v722_v5 = vpop.f32.mrb[0].mxu1 }
 0x462   :  { %799 = vst.msk [vmem:[#allocation9] sm:$0xff] %vm77_vm0, %v722_v5  ;;  %v866_v7 = vpop.f32.mrb[1].mxu1 }
 0x466   :  { %v795_v6 = vpop.f32.mrb[2].mxu1 }
 0x467   :  { %800 = vst.msk [vmem:[#allocation9 + $0x8] sm:$0xff] %vm77_vm0, %v795_v6  ;;  %v871_v8 = vpop.f32.mrb[3].mxu1 }
 0x468   :  { %998 = shalt.err (!%p995_p8)
}
 0x469   :  { %s999_s7 = scalar_lea.hbm %s1330_s5, 256 }
 0x46a   :  { %p1000_p9 = scmp.ne.s32.totalorder %s1330_s5, %s999_s7  ;;  %p1003_p10 = scmp.lt.u32.totalorder %s999_s7, %s1330_s5 }
 0x46c   :  { %p1005_p11 = pnand %p1003_p10, %p1000_p9 }
 0x46e   :  { %1008 = shalt.err (!%p1005_p11)
}
 0x46f   :  { %812 = dma.vmem_to_hbm [thread:$0]  %s807_s28, 256, %s1330_s5, [#allocation5], %s1019_s9, %s1019_s9, %s1020_s10  }
 0x470   :  { %1013 = dma.done.wait [#allocation5], 256  }
 0x471   :  { %1014 = vsyncadd [#allocation5], 4294967040 }
 0x472   :  { %1015 = dma.done.wait [#allocation11], 256  }
 0x473   :  { %1016 = vsyncadd [#allocation11], 4294967040 }
 0x474   :  { %831 = vsyncpa [#allocation4], 1 }
 0x475   :  { %832 = vsyncpa [#allocation7], 1 }
 0x476   :  { %833 = vsyncpa [#allocation5], 1 }
 0x477   :  { %834 = vsyncpa [#allocation11], 1 }

</bundles_post_ra>
